<compile_context>
chip_gen: v7x
topology: tpu7x:2x2x1
jax: 0.10.0
libtpu: 0.0.40
codegen_flags: <defaults>
</compile_context>

<pallas_src>
import functools

import jax
import jax.numpy as jnp
from jax import lax
from jax.experimental import pallas as pl
from jax.experimental.pallas import tpu as pltpu

NEG_SLOPE = 0.2      # PyG GATConv default leaky_relu slope
LN_EPS = 1e-5        # nn.LayerNorm default eps
MASK_VAL = -1e30     # finite mask keeps exp(m_prev - m_new) NaN-free for masked rows


def _round_up(x, m):
    return (x + m - 1) // m * m


def _choose_tiles(n):
    """Returns (n_pad, t_dst, t_src).  >=2 dst tiles whenever the graph is big
    enough so the 'parallel' dst axis shards across both TensorCores (v7x).
    Tile sizes keep each [H, t_dst, t_src] f32 attention temporary <= 4 MiB so the
    kernel fits comfortably inside a 48 MiB VMEM budget (v7x-safe)."""
    if n <= 128:
        n_pad = _round_up(max(n, 8), 8)
        return n_pad, n_pad, n_pad                    # tiny graph: one tile
    if n <= 512:
        n_pad = _round_up(n, 256)
        return n_pad, n_pad // 2, n_pad               # 2 dst tiles, full src
    n_pad = _round_up(n, 1024)
    return n_pad, 256, 1024


def _vmem_limit_bytes():
    """Generation-dependent VMEM limit: ~3/4 of physical capacity, capped.
    -> ~48 MiB on v7x (64 MiB physical), 96 MiB on v5e/v6e (128 MiB physical)."""
    try:
        cap = getattr(pltpu.get_tpu_info(), "vmem_capacity_bytes",
                      64 * 1024 * 1024)
    except Exception:
        cap = 64 * 1024 * 1024
    return int(min(cap * 3 // 4, 96 * 1024 * 1024))


def _block_diag(att):
    """att [H, C] -> block-diagonal [H*C, H] with A[h*C + c, h] = att[h, c]."""
    h, c = att.shape
    eye = jnp.eye(h, dtype=att.dtype)
    return (att[:, :, None] * eye[:, None, :]).reshape(h * c, h)


def _fold_attention(w, att_src, att_dst):
    """Wcat = [W | W @ blockdiag(att_dst) | W @ blockdiag(att_src)]  (bf16)."""
    return jnp.concatenate(
        [w, w @ _block_diag(att_dst), w @ _block_diag(att_src)], axis=1
    ).astype(jnp.bfloat16)


# ----------------------------------------------------------------------------
# Kernel 1: fused feature transform + attention logits (single matmul)
# ----------------------------------------------------------------------------
def _transform_kernel(x_ref, wcat_ref, h3_ref, adT_ref, asT_ref, *,
                      heads, head_dim):
    hc = heads * head_dim
    x = x_ref[...].astype(jnp.bfloat16)                  # [T, Fin]
    w = wcat_ref[...].astype(jnp.bfloat16)               # [Fin, hc + 2H]
    # one fused MXU matmul: [ h | alpha_dst | alpha_src ]  (no tiny K dots)
    hcat = jnp.dot(x, w, preferred_element_type=jnp.float32)     # [T, hc+2H] f32
    for hd in range(heads):                              # head-major h for batched PV
        h3_ref[hd] = hcat[:, hd * head_dim:(hd + 1) * head_dim].astype(jnp.bfloat16)
    adT_ref[...] = hcat[:, hc:hc + heads].T              # [H, T] (pre-transposed)
    asT_ref[...] = hcat[:, hc + heads:hc + 2 * heads].T  # [H, T]


def _feature_transform(x, wcat, *, heads, head_dim, t_rows):
    n_pad, fin = x.shape
    wtot = heads * head_dim + 2 * heads
    kernel = functools.partial(_transform_kernel, heads=heads, head_dim=head_dim)
    return pl.pallas_call(
        kernel,
        out_shape=(jax.ShapeDtypeStruct((heads, n_pad, head_dim), jnp.bfloat16),
                   jax.ShapeDtypeStruct((heads, n_pad), jnp.float32),
                   jax.ShapeDtypeStruct((heads, n_pad), jnp.float32)),
        grid=(n_pad // t_rows,),
        in_specs=[pl.BlockSpec((t_rows, fin), lambda i: (i, 0)),
                  pl.BlockSpec((fin, wtot), lambda i: (0, 0))],
        out_specs=(pl.BlockSpec((heads, t_rows, head_dim), lambda i: (0, i, 0)),
                   pl.BlockSpec((heads, t_rows), lambda i: (0, i)),
                   pl.BlockSpec((heads, t_rows), lambda i: (0, i))),
        compiler_params=pltpu.CompilerParams(
            dimension_semantics=("parallel",),
            vmem_limit_bytes=_vmem_limit_bytes()),
    )(x, wcat)


# ----------------------------------------------------------------------------
# Kernel 2: flash-style masked attention aggregation + fused epilogue
# ----------------------------------------------------------------------------
def _gat_attn_kernel(*refs, heads, head_dim, concat, epilogue):
    n_extra = {"none": 0, "ln": 2, "ln_skip": 5}[epilogue]
    occ_ref, adT_ref, asT_ref, h3_ref, adj_ref, bias_ref = refs[:6]
    extra = refs[6:6 + n_extra]
    out_ref = refs[6 + n_extra]
    m_sc, l_sc, acc_sc = refs[6 + n_extra + 1:]

    i = pl.program_id(0)
    j = pl.program_id(1)
    n_src = pl.num_programs(1)

    @pl.when(j == 0)
    def _init():
        m_sc[...] = jnp.full(m_sc.shape, -jnp.inf, jnp.float32)
        l_sc[...] = jnp.zeros(l_sc.shape, jnp.float32)
        acc_sc[...] = jnp.zeros(acc_sc.shape, jnp.float32)

    # Block-sparse skip: all-zero adjacency tiles contribute nothing.
    # TODO(synk): a compacted per-dst-tile src-tile list in the index_map would
    # additionally skip the adj DMA for empty tiles; here we only skip compute.
    @pl.when(occ_ref[i * n_src + j] > 0)
    def _compute():
        a_dst = adT_ref[...]                              # [H, Td] f32
        a_src = asT_ref[...]                              # [H, Ts] f32
        h_src = h3_ref[...]                               # [H, Ts, C] bf16
        # additive mask built ONCE per tile from the int8 adjacency (one select)
        mask_add = jnp.where(adj_ref[...] != 0, 0.0, MASK_VAL)   # [Td, Ts] f32

        # e[h, i, j] = leaky_relu(a_dst[h,i] + a_src[h,j]) + mask
        e = a_dst[:, :, None] + a_src[:, None, :]                 # [H, Td, Ts]
        e = jnp.where(e > 0, e, NEG_SLOPE * e) + mask_add[None, :, :]

        m_prev = m_sc[...]                                        # [H, Td]
        m_new = jnp.maximum(m_prev, jnp.max(e, axis=-1))          # [H, Td]
        corr = jnp.exp(m_prev - m_new)                            # [H, Td]
        p = jnp.exp(e - m_new[:, :, None])                        # [H, Td, Ts] f32

        # one head-batched MXU matmul (no per-head N=8 dots); cast right before MXU
        pv = jnp.einsum("hts,hsc->htc", p.astype(jnp.bfloat16), h_src,
                        preferred_element_type=jnp.float32)       # [H, Td, C]

        # lane-dense, once-per-step scratch stores (no per-head RMW slices)
        l_sc[...] = corr * l_sc[...] + jnp.sum(p, axis=-1)
        acc_sc[...] = corr[:, :, None] * acc_sc[...] + pv
        m_sc[...] = m_new
        # TODO(synk): attention-coefficient dropout is identity here (eval mode).

    @pl.when(j == n_src - 1)
    def _finalize():
        # exact reciprocal (finalize is cold); guard fully-masked / padded rows
        inv_l = 1.0 / jnp.maximum(l_sc[...], 1e-30)               # [H, Td]
        normed = acc_sc[...] * inv_l[:, :, None]                  # [H, Td, C]
        if concat:
            out = jnp.concatenate([normed[hd] for hd in range(heads)], axis=-1)
            out = out + bias_ref[...]                             # [Td, H*C]
        else:
            out = jnp.sum(normed, axis=0) * (1.0 / heads) + bias_ref[...]  # [Td, C]

        if epilogue in ("ln", "ln_skip"):
            gamma_ref, beta_ref = extra[0], extra[1]
            y = jnp.where(out > 0, out,
                          jnp.exp(jnp.minimum(out, 0.0)) - 1.0)   # ELU(alpha=1)
            mean = jnp.mean(y, axis=-1, keepdims=True)
            var = jnp.mean((y - mean) * (y - mean), axis=-1, keepdims=True)
            out = ((y - mean) * lax.rsqrt(var + LN_EPS)
                   * gamma_ref[...] + beta_ref[...])
            # TODO(synk): feature dropout is identity here (eval mode).
        if epilogue == "ln_skip":
            xs_ref, wp_ref, bp_ref = extra[2], extra[3], extra[4]
            skip = jnp.dot(xs_ref[...].astype(jnp.bfloat16),
                           wp_ref[...].astype(jnp.bfloat16),
                           preferred_element_type=jnp.float32)
            out = out + skip + bp_ref[...]

        out_ref[...] = out


def gat_conv_layer(x, adj_i8, occ, wcat, bias, *, heads, head_dim, concat,
                   t_dst, t_src, epilogue="none", extra_inputs=()):
    n_pad = x.shape[0]
    hc = heads * head_dim
    out_dim = hc if concat else head_dim

    # 1) fused feature transform + attention logits
    h3, a_dstT, a_srcT = _feature_transform(x, wcat, heads=heads,
                                            head_dim=head_dim, t_rows=t_dst)

    in_specs = [
        pl.BlockSpec((heads, t_dst), lambda i, j, occ_r: (0, i)),            # a_dst^T
        pl.BlockSpec((heads, t_src), lambda i, j, occ_r: (0, j)),            # a_src^T
        pl.BlockSpec((heads, t_src, head_dim), lambda i, j, occ_r: (0, j, 0)),  # h_src
        pl.BlockSpec((t_dst, t_src), lambda i, j, occ_r: (i, j)),            # adj int8
        pl.BlockSpec((1, out_dim), lambda i, j, occ_r: (0, 0)),              # bias
    ]
    operands = [a_dstT, a_srcT, h3, adj_i8, bias]

    if epilogue in ("ln", "ln_skip"):
        gamma, beta = extra_inputs[0], extra_inputs[1]
        in_specs += [pl.BlockSpec((1, out_dim), lambda i, j, occ_r: (0, 0)),
                     pl.BlockSpec((1, out_dim), lambda i, j, occ_r: (0, 0))]
        operands += [gamma, beta]
    if epilogue == "ln_skip":
        xs, wp, bp = extra_inputs[2], extra_inputs[3], extra_inputs[4]
        fin = xs.shape[1]
        in_specs += [pl.BlockSpec((t_dst, fin), lambda i, j, occ_r: (i, 0)),
                     pl.BlockSpec((fin, out_dim), lambda i, j, occ_r: (0, 0)),
                     pl.BlockSpec((1, out_dim), lambda i, j, occ_r: (0, 0))]
        operands += [xs, wp, bp]

    kernel = functools.partial(_gat_attn_kernel, heads=heads, head_dim=head_dim,
                               concat=concat, epilogue=epilogue)

    return pl.pallas_call(
        kernel,
        out_shape=jax.ShapeDtypeStruct((n_pad, out_dim), jnp.float32),
        grid_spec=pltpu.PrefetchScalarGridSpec(
            num_scalar_prefetch=1,
            grid=(n_pad // t_dst, n_pad // t_src),
            in_specs=in_specs,
            out_specs=pl.BlockSpec((t_dst, out_dim), lambda i, j, occ_r: (i, 0)),
            scratch_shapes=[pltpu.VMEM((heads, t_dst), jnp.float32),            # m
                            pltpu.VMEM((heads, t_dst), jnp.float32),            # l
                            pltpu.VMEM((heads, t_dst, head_dim), jnp.float32)]),  # acc
        compiler_params=pltpu.CompilerParams(
            dimension_semantics=("parallel", "arbitrary"),
            vmem_limit_bytes=_vmem_limit_bytes()),
    )(occ, *operands)


# ----------------------------------------------------------------------------
# Parameter init (deterministic, synthetic)
# ----------------------------------------------------------------------------
def init_params(key, in_channels, hidden, out_channels, heads):
    def dense(k, fan_in, shape):
        return jax.random.normal(k, shape, jnp.float32) / jnp.sqrt(fan_in)

    hid_cat = hidden * heads
    ks = jax.random.split(key, 20)
    return {
        # gat1: in -> hidden per head, concat
        "w1":  dense(ks[0], in_channels, (in_channels, heads * hidden)),
        "as1": dense(ks[1], hidden, (heads, hidden)),
        "ad1": dense(ks[2], hidden, (heads, hidden)),
        "b1":  jnp.zeros((1, heads * hidden), jnp.float32),
        # gat2: hid_cat -> hidden per head, concat
        "w2":  dense(ks[3], hid_cat, (hid_cat, heads * hidden)),
        "as2": dense(ks[4], hidden, (heads, hidden)),
        "ad2": dense(ks[5], hidden, (heads, hidden)),
        "b2":  jnp.zeros((1, heads * hidden), jnp.float32),
        # gat3: hid_cat -> out per head, mean over heads
        "w3":  dense(ks[6], hid_cat, (hid_cat, heads * out_channels)),
        "as3": dense(ks[7], out_channels, (heads, out_channels)),
        "ad3": dense(ks[8], out_channels, (heads, out_channels)),
        "b3":  jnp.zeros((1, out_channels), jnp.float32),
        # layer norms
        "g1":  jnp.ones((1, hid_cat), jnp.float32),
        "be1": jnp.zeros((1, hid_cat), jnp.float32),
        "g2":  jnp.ones((1, hid_cat), jnp.float32),
        "be2": jnp.zeros((1, hid_cat), jnp.float32),
        # proj_skip linear
        "wp":  dense(ks[9], in_channels, (in_channels, hid_cat)),
        "bp":  dense(ks[10], in_channels, (1, hid_cat)),
    }


# ----------------------------------------------------------------------------
# Full forward (mirrors GAT.forward; dropout layers are identity in eval mode)
# ----------------------------------------------------------------------------
def gat_forward(params, x, adj, *, heads, hidden, out_channels):
    n = x.shape[0]
    n_pad, t_dst, t_src = _choose_tiles(n)
    if n_pad != n:
        x = jnp.pad(x, ((0, n_pad - n), (0, 0)))
        adj = jnp.pad(adj, ((0, n_pad - n), (0, n_pad - n)))
    adj_i8 = (adj != 0).astype(jnp.int8)        # adjacency only feeds a "!= 0" mask

    # per-(dst_tile, src_tile) occupancy table for block-sparse tile skipping
    nd, ns = n_pad // t_dst, n_pad // t_src
    occ = jnp.any(adj_i8.reshape(nd, t_dst, ns, t_src) != 0,
                  axis=(1, 3)).astype(jnp.int32).reshape(-1)

    # fold the per-head attention vectors into the transform weights (host side)
    wcat1 = _fold_attention(params["w1"], params["as1"], params["ad1"])
    wcat2 = _fold_attention(params["w2"], params["as2"], params["ad2"])
    wcat3 = _fold_attention(params["w3"], params["as3"], params["ad3"])

    x_skip = x
    # gat1 -> ELU -> norm1 -> (dropout=id) -> + proj_skip(x_skip)   (fully fused)
    h = gat_conv_layer(x, adj_i8, occ, wcat1, params["b1"], heads=heads,
                       head_dim=hidden, concat=True, t_dst=t_dst, t_src=t_src,
                       epilogue="ln_skip",
                       extra_inputs=(params["g1"], params["be1"],
                                     x_skip, params["wp"], params["bp"]))
    # gat2 -> ELU -> norm2 -> (dropout=id)
    h = gat_conv_layer(h, adj_i8, occ, wcat2, params["b2"], heads=heads,
                       head_dim=hidden, concat=True, t_dst=t_dst, t_src=t_src,
                       epilogue="ln", extra_inputs=(params["g2"], params["be2"]))
    # gat3 (mean over heads)
    out = gat_conv_layer(h, adj_i8, occ, wcat3, params["b3"], heads=heads,
                         head_dim=out_channels, concat=False,
                         t_dst=t_dst, t_src=t_src, epilogue="none")
    return out[:n]


def build_dense_adj(edge_index, num_nodes):
    """adj[dst, src] = 1 for each edge src->dst; plus self-loops."""
    src, dst = edge_index[0], edge_index[1]
    adj = jnp.zeros((num_nodes, num_nodes), jnp.float32)
    adj = adj.at[dst, src].set(1.0)
    adj = jnp.maximum(adj, jnp.eye(num_nodes, dtype=jnp.float32))
    return adj


if __name__ == "__main__":
    N = 8                 # nodes
    IN_CH = 16            # in_channels
    HIDDEN = 8            # hidden_channels
    OUT_CH = 8            # out_channels
    HEADS = 4

    key = jax.random.PRNGKey(0)
    kx, kp = jax.random.split(key)

    x = jax.random.normal(kx, (N, IN_CH), jnp.float32)

    # deterministic small graph: bidirectional ring
    src = jnp.concatenate([jnp.arange(N), (jnp.arange(N) + 1) % N])
    dst = jnp.concatenate([(jnp.arange(N) + 1) % N, jnp.arange(N)])
    edge_index = jnp.stack([src, dst], axis=0).astype(jnp.int32)   # [2, 16]
    adj = build_dense_adj(edge_index, N)

    params = init_params(kp, IN_CH, HIDDEN, OUT_CH, HEADS)

    out = gat_forward(params, x, adj, heads=HEADS, hidden=HIDDEN,
                      out_channels=OUT_CH)
    out = jax.block_until_ready(out)
    assert out.shape == (N, OUT_CH), out.shape
    assert bool(jnp.all(jnp.isfinite(out)))
    print("KERNEL_OK")
</pallas_src>

<mosaic_0001>
module attributes {stable_mosaic.version = 11 : i64} {
  func.func @_transform_kernel(%arg0: i32, %arg1: memref<8x16xf32, #tpu.memory_space<vmem>>, %arg2: memref<16x40xbf16, #tpu.memory_space<vmem>>, %arg3: memref<4x8x8xbf16, #tpu.memory_space<vmem>>, %arg4: memref<4x8xf32, #tpu.memory_space<vmem>>, %arg5: memref<4x8xf32, #tpu.memory_space<vmem>>) attributes {dimension_semantics = [#tpu.dimension_semantics<parallel>], iteration_bounds = array<i64: 1>, scalar_prefetch = 0 : i64, scratch_operands = 0 : i64, tpu.core_type = #tpu.core_type<tc>, window_params = [{transform_indices = @transform_0, window_bounds = array<i64: 8, 16>}, {pipeline_mode = #tpu.pipeline_mode<synchronous>, transform_indices = @transform_1, window_bounds = array<i64: 16, 40>}, {transform_indices = @transform_2, window_bounds = array<i64: 4, 8, 8>}, {transform_indices = @transform_3, window_bounds = array<i64: 4, 8>}, {transform_indices = @transform_4, window_bounds = array<i64: 4, 8>}]} {
    %c0 = arith.constant 0 : index
    %c0_0 = arith.constant 0 : index
    %0 = vector.load %arg1[%c0, %c0_0] : memref<8x16xf32, #tpu.memory_space<vmem>>, vector<8x16xf32>
    %1 = arith.truncf %0 : vector<8x16xf32> to vector<8x16xbf16>
    %c0_1 = arith.constant 0 : index
    %c0_2 = arith.constant 0 : index
    %2 = vector.load %arg2[%c0_1, %c0_2] : memref<16x40xbf16, #tpu.memory_space<vmem>>, vector<16x40xbf16>
    %cst = arith.constant dense<0.000000e+00> : vector<8x40xf32>
    %3 = tpu.matmul %1, %2, %cst {dimension_numbers = #tpu.dot_dimension_numbers<[1], [0], [0], [1], [0, 0, 1, 1], [], []>} : vector<8x16xbf16>, vector<16x40xbf16>, vector<8x40xf32> -> vector<8x40xf32>
    %4 = vector.extract_strided_slice %3 {offsets = [0, 0], sizes = [8, 8], strides = [1, 1]} : vector<8x40xf32> to vector<8x8xf32>
    %5 = arith.truncf %4 : vector<8x8xf32> to vector<8x8xbf16>
    %c0_3 = arith.constant 0 : index
    %c0_4 = arith.constant 0 : index
    %c0_5 = arith.constant 0 : index
    %6 = vector.load %arg3[%c0_3, %c0_4, %c0_5] : memref<4x8x8xbf16, #tpu.memory_space<vmem>>, vector<1x8x8xbf16>
    %7 = vector.shape_cast %6 : vector<1x8x8xbf16> to vector<8x8xbf16>
    %8 = vector.shape_cast %5 : vector<8x8xbf16> to vector<1x8x8xbf16>
    tpu.vector_store %arg3[%c0_3, %c0_4, %c0_5], %8 {strides = array<i32>} : memref<4x8x8xbf16, #tpu.memory_space<vmem>>, vector<1x8x8xbf16>,
    %9 = vector.extract_strided_slice %3 {offsets = [0, 8], sizes = [8, 8], strides = [1, 1]} : vector<8x40xf32> to vector<8x8xf32>
    %10 = arith.truncf %9 : vector<8x8xf32> to vector<8x8xbf16>
    %c1 = arith.constant 1 : index
    %c0_6 = arith.constant 0 : index
    %c0_7 = arith.constant 0 : index
    %11 = vector.load %arg3[%c1, %c0_6, %c0_7] : memref<4x8x8xbf16, #tpu.memory_space<vmem>>, vector<1x8x8xbf16>
    %12 = vector.shape_cast %11 : vector<1x8x8xbf16> to vector<8x8xbf16>
    %13 = vector.shape_cast %10 : vector<8x8xbf16> to vector<1x8x8xbf16>
    tpu.vector_store %arg3[%c1, %c0_6, %c0_7], %13 {strides = array<i32>} : memref<4x8x8xbf16, #tpu.memory_space<vmem>>, vector<1x8x8xbf16>,
    %14 = vector.extract_strided_slice %3 {offsets = [0, 16], sizes = [8, 8], strides = [1, 1]} : vector<8x40xf32> to vector<8x8xf32>
    %15 = arith.truncf %14 : vector<8x8xf32> to vector<8x8xbf16>
    %c2 = arith.constant 2 : index
    %c0_8 = arith.constant 0 : index
    %c0_9 = arith.constant 0 : index
    %16 = vector.load %arg3[%c2, %c0_8, %c0_9] : memref<4x8x8xbf16, #tpu.memory_space<vmem>>, vector<1x8x8xbf16>
    %17 = vector.shape_cast %16 : vector<1x8x8xbf16> to vector<8x8xbf16>
    %18 = vector.shape_cast %15 : vector<8x8xbf16> to vector<1x8x8xbf16>
    tpu.vector_store %arg3[%c2, %c0_8, %c0_9], %18 {strides = array<i32>} : memref<4x8x8xbf16, #tpu.memory_space<vmem>>, vector<1x8x8xbf16>,
    %19 = vector.extract_strided_slice %3 {offsets = [0, 24], sizes = [8, 8], strides = [1, 1]} : vector<8x40xf32> to vector<8x8xf32>
    %20 = arith.truncf %19 : vector<8x8xf32> to vector<8x8xbf16>
    %c3 = arith.constant 3 : index
    %c0_10 = arith.constant 0 : index
    %c0_11 = arith.constant 0 : index
    %21 = vector.load %arg3[%c3, %c0_10, %c0_11] : memref<4x8x8xbf16, #tpu.memory_space<vmem>>, vector<1x8x8xbf16>
    %22 = vector.shape_cast %21 : vector<1x8x8xbf16> to vector<8x8xbf16>
    %23 = vector.shape_cast %20 : vector<8x8xbf16> to vector<1x8x8xbf16>
    tpu.vector_store %arg3[%c3, %c0_10, %c0_11], %23 {strides = array<i32>} : memref<4x8x8xbf16, #tpu.memory_space<vmem>>, vector<1x8x8xbf16>,
    %24 = vector.extract_strided_slice %3 {offsets = [0, 32], sizes = [8, 4], strides = [1, 1]} : vector<8x40xf32> to vector<8x4xf32>
    %25 = tpu.transpose %24, [1, 0] : vector<8x4xf32> -> vector<4x8xf32>
    %c0_12 = arith.constant 0 : index
    %c0_13 = arith.constant 0 : index
    %26 = vector.load %arg4[%c0_12, %c0_13] : memref<4x8xf32, #tpu.memory_space<vmem>>, vector<4x8xf32>
    tpu.vector_store %arg4[%c0_12, %c0_13], %25 {strides = array<i32>} : memref<4x8xf32, #tpu.memory_space<vmem>>, vector<4x8xf32>,
    %27 = vector.extract_strided_slice %3 {offsets = [0, 36], sizes = [8, 4], strides = [1, 1]} : vector<8x40xf32> to vector<8x4xf32>
    %28 = tpu.transpose %27, [1, 0] : vector<8x4xf32> -> vector<4x8xf32>
    %c0_14 = arith.constant 0 : index
    %c0_15 = arith.constant 0 : index
    %29 = vector.load %arg5[%c0_14, %c0_15] : memref<4x8xf32, #tpu.memory_space<vmem>>, vector<4x8xf32>
    tpu.vector_store %arg5[%c0_14, %c0_15], %28 {strides = array<i32>} : memref<4x8xf32, #tpu.memory_space<vmem>>, vector<4x8xf32>,
    return
  }
  func.func @transform_0(%arg0: i32) -> (i32, i32) {
    %c0_i32 = arith.constant 0 : i32
    %c0_i32_0 = arith.constant 0 : i32
    return %arg0, %c0_i32 : i32, i32
  }
  func.func @transform_1(%arg0: i32) -> (i32, i32) {
    %c0_i32 = arith.constant 0 : i32
    %c0_i32_0 = arith.constant 0 : i32
    %c0_i32_1 = arith.constant 0 : i32
    return %c0_i32, %c0_i32_0 : i32, i32
  }
  func.func @transform_2(%arg0: i32) -> (i32, i32, i32) {
    %c0_i32 = arith.constant 0 : i32
    %c0_i32_0 = arith.constant 0 : i32
    %c0_i32_1 = arith.constant 0 : i32
    return %c0_i32, %arg0, %c0_i32_0 : i32, i32, i32
  }
  func.func @transform_3(%arg0: i32) -> (i32, i32) {
    %c0_i32 = arith.constant 0 : i32
    %c0_i32_0 = arith.constant 0 : i32
    return %c0_i32, %arg0 : i32, i32
  }
  func.func @transform_4(%arg0: i32) -> (i32, i32) {
    %c0_i32 = arith.constant 0 : i32
    %c0_i32_0 = arith.constant 0 : i32
    return %c0_i32, %arg0 : i32, i32
  }
}

</mosaic_0001>

<bundles_post_ra>
// kernel: tpu_custom_call.1
= control target key start
LH: loop header
LB: loop body
LE: loop exit
PB: predicated region body
PF: predicated region fallthrough
CT: control target
= control target key end

     0   :  { %10 = vsyncpa [#allocation3], 0  ;;  %s499_s0 = inlined_call_operand.hbm [shape: f32[8,16], index: 0, kind: input, shape index: {}]   ;;  %s500_s1 = inlined_call_operand.hbm [shape: bf16[16,40], index: 1, kind: input, shape index: {}]   ;;  %s501_s2 = inlined_call_operand.hbm [shape: bf16[4,8,8], index: 2, kind: output, shape index: {0}]   ;;  %s502_s3 = inlined_call_operand.hbm [shape: f32[4,8], index: 3, kind: output, shape index: {1}]   ;;  %s503_s4 = inlined_call_operand.hbm [shape: f32[4,8], index: 4, kind: output, shape index: {2}]  }
   0x1   :  { %11 = vsyncpa [#allocation6], 0 }
   0x2   :  { %12 = vsyncpa [#allocation4], 0 }
   0x3   :  { %13 = vsyncpa [#allocation9], 0  ;;  %s381_s15 = smov [#allocation2]   ;;  %s382_s17 = smov [#allocation5]  }
   0x4   :  { %s20_s16 = sshll.u32 %s381_s15, 4  ;;  %s29_s18 = sshll.u32 %s382_s17, 4  ;;  %s21_s16 = int_to_ptr.vmem [resolvable:$true] %s20_s16  ;;  %s420_s18 = int_to_ptr.vmem [resolvable:$true] %s29_s18 }
   0x5   :  { %s263_s21 = scalar_lea.hbm %s499_s0, 128 }
   0x6   :  { %p264_p0 = scmp.ne.s32.totalorder %s499_s0, %s263_s21  ;;  %p267_p1 = scmp.lt.u32.totalorder %s263_s21, %s499_s0 }
   0x8   :  { %p269_p2 = pnand %p267_p1, %p264_p0 }
   0xa   :  { %272 = shalt.err (!%p269_p2)
}
   0xb   :  { %s273_s26 = scalar_lea.vmem %s21_s16, 128  ;;  %p278_p4 = scmp.lt.s32.totalorder %s21_s16, %s21_s16 }
   0xc   :  { %p274_p3 = scmp.ne.s32.totalorder %s21_s16, %s273_s26  ;;  %p279_p5 = scmp.lt.s32.totalorder %s273_s26, %s273_s26 }
   0xe   :  { %p280_p6 = por %p279_p5, %p278_p4 }
  0x10   :  { %p281_p7 = pnand %p280_p6, %p274_p3 }
  0x12   :  { %284 = shalt.err (!%p281_p7)
}
  0x13   :  { %23 = dma.hbm_to_vmem [thread:$0]  %s499_s0, 128, %s21_s16, [#allocation3]  }
  0x14   :  { %s285_s5 = scalar_lea.hbm %s500_s1, 128 }
  0x15   :  { %p286_p8 = scmp.ne.s32.totalorder %s500_s1, %s285_s5  ;;  %p289_p9 = scmp.lt.u32.totalorder %s285_s5, %s500_s1 }
  0x17   :  { %p291_p10 = pnand %p289_p9, %p286_p8 }
  0x19   :  { %294 = shalt.err (!%p291_p10)
}
  0x1a   :  { %s295_s10 = scalar_lea.vmem %s420_s18, 128  ;;  %p300_p12 = scmp.lt.s32.totalorder %s420_s18, %s420_s18 }
  0x1b   :  { %p296_p11 = scmp.ne.s32.totalorder %s420_s18, %s295_s10  ;;  %p301_p13 = scmp.lt.s32.totalorder %s295_s10, %s295_s10 }
  0x1d   :  { %p302_p0 = por %p301_p13, %p300_p12 }
  0x1f   :  { %p303_p1 = pnand %p302_p0, %p296_p11 }
  0x21   :  { %306 = shalt.err (!%p303_p1)
}
  0x22   :  { %s383_s0 = smov 64   ;;  %s384_s11 = smov 4  }
  0x23   :  { %35 = dma.hbm_to_vmem [thread:$0]  %s500_s1, 128, %s420_s18, [#allocation6], %s383_s0, %s383_s0, %s384_s11  }
  0x24   :  { %373 = dma.done.wait [#allocation3], 128  }
  0x25   :  { %374 = vsyncadd [#allocation3], 4294967168 }
  0x26   :  { %375 = dma.done.wait [#allocation6], 128  }
  0x27   :  { %376 = vsyncadd [#allocation6], 4294967168  ;;  %v385_v0 = vmov 0.0   ;;  %vm386_vm0 = vmmov 0   ;;  %v262_v1 = vld [vmem:[#allocation5] sm:$0xff]   ;;  %v43_v2 = vld [vmem:[#allocation2] sm:$0xff] }
  0x28   :  { %242 = vmatprep.subr.bf16.mxu0 %v385_v0  ;;  %244 = vmatprep.mubr.msk.bf16.mxu0 %vm386_vm0, %v385_v0  ;;  %v44_v3 = vpack.c.bf16 %v43_v2, %v43_v2  ;;  %vm53_vm1 = vcmask 130048   ;;  %vm98_vm2 = vcmask 60416   ;;  %s387_s14 = smov 96   ;;  %s388_s1 = smov 120  }
  0x29   :  { %243 = vmatpush3.bf16.msra.mxu0 %v262_v1  ;;  %s389_s15 = smov 92   ;;  %s390_s16 = smov 112  }
  0x2a   :  { %s391_s17 = smov 104   ;;  %s392_s18 = smov [#allocation7]  }
  0x2b   :  { %s196_s19 = sshll.u32 %s392_s18, 4  ;;  %s197_s19 = int_to_ptr.vmem [resolvable:$true] %s196_s19 }
  0x2c   :  { %245 = vmatmul.mubr.msk.bf16.vlgmr.msra.gmra.mrb[0].mxu0 %vm53_vm1, %v44_v3  ;;  %s307_s20 = scalar_lea.vmem %s197_s19, 256  ;;  %p312_p3 = scmp.lt.s32.totalorder %s197_s19, %s197_s19 }
  0x2d   :  { %p308_p2 = scmp.ne.s32.totalorder %s197_s19, %s307_s20  ;;  %p313_p4 = scmp.lt.s32.totalorder %s307_s20, %s307_s20 }
  0x2f   :  { %p314_p5 = por %p313_p4, %p312_p3 }
  0x31   :  { %p315_p6 = pnand %p314_p5, %p308_p2 }
  0xff   :  { %v91_v4 = vpop.f32.mrb[0].mxu0 }
 0x100   :  { %v97_v5 = vpack.c.bf16 %v91_v4, %v91_v4  ;;  %119 = vrot.lane.b32.xlu0 %v91_v4, %s387_s14  ;;  %v246_v6 = vpop.f32.mrb[1].mxu0 }
 0x101   :  { %v94_v7 = vpop.f32.mrb[2].mxu0 }
 0x102   :  { %103 = vrot.lane.b32.xlu1 %v97_v5, %s388_s1  ;;  %v247_v8 = vpop.f32.mrb[3].mxu0  ;;  %99 = vst.msk [vmem:[#allocation7] sm:$0xf] %vm98_vm2, %v97_v5 }
 0x104   :  { %155 = vrot.lane.b32.xlu0 %v91_v4, %s389_s15 }
 0x106   :  { %108 = vrot.lane.b32.xlu1 %v97_v5, %s390_s16 }
 0x108   :  { %113 = vrot.lane.b32.xlu0 %v97_v5, %s391_s17 }
 0x172   :  { %v120_v9 = vpop.permute.xlu0 %119 }
 0x173   :  { %122 = vxpose.xlu1.b32.start.end [1/1] (short) (narrow) %v120_v9, 8 }
 0x174   :  { %v104_v10 = vpop.permute.xlu1 %103 }
 0x175   :  { %107 = vst.msk [vmem:[#allocation7 + $0x4] sm:$0xf] %vm98_vm2, %v104_v10 }
 0x176   :  { %v156_v11 = vpop.permute.xlu0 %155 }
 0x177   :  { %158 = vxpose.xlu0.b32.start.end [1/1] (short) (narrow) %v156_v11, 8 }
 0x178   :  { %v109_v12 = vpop.permute.xlu1 %108 }
 0x179   :  { %112 = vst.msk [vmem:[#allocation7 + $0x8] sm:$0xf] %vm98_vm2, %v109_v12 }
 0x17a   :  { %v114_v13 = vpop.permute.xlu0 %113 }
 0x17b   :  { %117 = vst.msk [vmem:[#allocation7 + $0xc] sm:$0xf] %vm98_vm2, %v114_v13 }
 0x17c   :  { %318 = shalt.err (!%p315_p6)
}
 0x17d   :  { %s319_s23 = scalar_lea.hbm %s501_s2, 256 }
 0x17e   :  { %p320_p7 = scmp.ne.s32.totalorder %s501_s2, %s319_s23  ;;  %p323_p8 = scmp.lt.u32.totalorder %s319_s23, %s501_s2 }
 0x180   :  { %p325_p9 = pnand %p323_p8, %p320_p7 }
 0x182   :  { %328 = shalt.err (!%p325_p9)
}
 0x183   :  { %202 = dma.vmem_to_hbm [thread:$0]  %s197_s19, 256, %s501_s2, [#allocation4], %s383_s0, %s383_s0, %s384_s11  }
 0x184   :  { %s393_s30 = smov [#allocation8]   ;;  %s394_s6 = smov [#allocation10]  }
 0x185   :  { %s209_s5 = sshll.u32 %s393_s30, 4  ;;  %s219_s7 = sshll.u32 %s394_s6, 4  ;;  %s210_s5 = int_to_ptr.vmem [resolvable:$true] %s209_s5  ;;  %s220_s7 = int_to_ptr.vmem [resolvable:$true] %s219_s7 }
 0x186   :  { %s329_s8 = scalar_lea.vmem %s210_s5, 64  ;;  %p334_p11 = scmp.lt.s32.totalorder %s210_s5, %s210_s5 }
 0x187   :  { %p330_p10 = scmp.ne.s32.totalorder %s210_s5, %s329_s8  ;;  %p335_p12 = scmp.lt.s32.totalorder %s329_s8, %s329_s8 }
 0x189   :  { %p336_p13 = por %p335_p12, %p334_p11 }
 0x18b   :  { %p337_p0 = pnand %p336_p13, %p330_p10 }
 0x1f3   :  { %v138_v14 = vpop.trf.xlu1 }
 0x1f4   :  { %154 = vst.msk [vmem:[#allocation8] sm:$0xf] %vm98_vm2, %v138_v14 }
 0x1f5   :  { %340 = shalt.err (!%p337_p0)
}
 0x1f6   :  { %s341_s12 = scalar_lea.hbm %s502_s3, 64 }
 0x1f7   :  { %p342_p1 = scmp.ne.s32.totalorder %s502_s3, %s341_s12  ;;  %p345_p2 = scmp.lt.u32.totalorder %s341_s12, %s502_s3 }
 0x1f9   :  { %p347_p3 = pnand %p345_p2, %p342_p1 }
 0x1fb   :  { %350 = shalt.err (!%p347_p3)
}
 0x1fc   :  { %212 = dma.vmem_to_hbm [thread:$0]  %s210_s5, 64, %s502_s3, [#allocation9]   ;;  %v174_v15 = vpop.trf.xlu0 }
 0x1fd   :  { %190 = vst.msk [vmem:[#allocation10] sm:$0xf] %vm98_vm2, %v174_v15  ;;  %s351_s15 = scalar_lea.vmem %s220_s7, 64  ;;  %p356_p5 = scmp.lt.s32.totalorder %s220_s7, %s220_s7 }
 0x1fe   :  { %p352_p4 = scmp.ne.s32.totalorder %s220_s7, %s351_s15  ;;  %p357_p6 = scmp.lt.s32.totalorder %s351_s15, %s351_s15 }
 0x200   :  { %p358_p7 = por %p357_p6, %p356_p5 }
 0x202   :  { %p359_p8 = pnand %p358_p7, %p352_p4 }
 0x204   :  { %362 = shalt.err (!%p359_p8)
}
 0x205   :  { %s363_s18 = scalar_lea.hbm %s503_s4, 64 }
 0x206   :  { %p364_p9 = scmp.ne.s32.totalorder %s503_s4, %s363_s18  ;;  %p367_p10 = scmp.lt.u32.totalorder %s363_s18, %s503_s4 }
 0x208   :  { %p369_p11 = pnand %p367_p10, %p364_p9 }
 0x20a   :  { %372 = shalt.err (!%p369_p11)
}
 0x20b   :  { %222 = dma.vmem_to_hbm [thread:$0]  %s220_s7, 64, %s503_s4, [#allocation9]  }
 0x20c   :  { %377 = dma.done.wait [#allocation4], 256  }
 0x20d   :  { %378 = vsyncadd [#allocation4], 4294967040 }
 0x20e   :  { %379 = dma.done.wait [#allocation9], 128  }
 0x20f   :  { %380 = vsyncadd [#allocation9], 4294967168 }
 0x210   :  { %232 = vsyncpa [#allocation3], 1 }
 0x211   :  { %233 = vsyncpa [#allocation6], 1 }
 0x212   :  { %234 = vsyncpa [#allocation4], 1 }
 0x213   :  { %235 = vsyncpa [#allocation9], 1 }

</bundles_post_ra>
